<compile_context>
chip_gen: v5e
topology: v5e:2x2
jax: 0.10.0
libtpu: 0.0.40
codegen_flags: <defaults>
</compile_context>

<pallas_src>
import jax
import jax.numpy as jnp
from jax import lax
from jax.experimental import pallas as pl
from jax.experimental.pallas import tpu as pltpu

OUT_PAD = 128    # lane-dense padded width of the fc2 output slab
GATE_PAD = 128   # per-gate lane padding (r / z / n_i / n_h blocks)
FC1_PAD = 128    # lane padding of the fc1 width (true width = 20)
OUT_DIM = 2      # nn.Linear(20, 2) in the module spec
FC1_DIM = 20     # nn.Linear(hidden+1, 20) in the module spec
SUBLANE = 8      # f32 sublane tile -> batch padding


def gru_mlp_kernel(idx_ref, h_ref, tag_ref,
                   emb_ref, wg_ref, bg_ref,
                   w1h_ref, w1tb_ref, w2_ref, b2_ref,
                   out_ref, hnew_ref):
    f32 = jnp.float32
    B, SEQ = idx_ref.shape
    H = h_ref.shape[1]
    VPAD = emb_ref.shape[0] // SEQ          # 128-aligned per-position vocab block
    GP = wg_ref.shape[1] // 4               # 128-lane gate block

    # --- embedding gather as a one-hot matmul (exact; no HBM round trip of x) ------
    idx = idx_ref[...]
    iota_v = lax.broadcasted_iota(jnp.int32, (B, VPAD), 1)
    parts = [(idx[:, s:s + 1] == iota_v).astype(f32) for s in range(SEQ)]
    onehot = jnp.concatenate(parts, axis=1)                          # (B, SEQ*VPAD)
    x = jnp.dot(onehot, emb_ref[...], preferred_element_type=f32)    # (B, SEQ*EMB)

    # --- GRU cell: ONE fused gate matmul, f32 end-to-end ---------------------------
    h = h_ref[...]
    xh = jnp.concatenate([x, h], axis=1)                             # (B, D+H)
    g = jnp.dot(xh, wg_ref[...], preferred_element_type=f32) + bg_ref[...]  # (B, 4*GP)

    r = jax.nn.sigmoid(g[:, 0:GP])                    # whole 128-lane vreg slices
    z = jax.nn.sigmoid(g[:, GP:2 * GP])
    n = jnp.tanh(g[:, 2 * GP:3 * GP] + r * g[:, 3 * GP:4 * GP])
    h_new = n[:, :H] + z[:, :H] * (h - n[:, :H])      # == (1-z)*n + z*h
    hnew_ref[...] = h_new                             # aliased onto the h input buffer

    # --- fc1 on concat([h_new, tag]) without an in-kernel concat -------------------
    # cat @ W1.T == h_new @ W1[:, :H].T + tag * W1[:, H]   (rank-1 tag path -> VPU)
    a1 = (jnp.dot(h_new, w1h_ref[...], preferred_element_type=f32)
          + tag_ref[...] * w1tb_ref[0:1, :]
          + w1tb_ref[1:2, :])
    a1 = jnp.where(a1 > 0, a1, 0.01 * a1)             # LeakyReLU (default slope 0.01)

    # --- fc2: lane-dense (B, 128) output slab ---------------------------------------
    out_ref[...] = jnp.dot(a1, w2_ref[...], preferred_element_type=f32) + b2_ref[...]


def prepare_params(params):
    """One-time re-layout of the PyTorch-style parameters into kernel layout (f32)."""
    f32 = jnp.float32
    emb = params["embedding"].astype(f32)
    VOCAB, EMB = emb.shape
    H3, D = params["w_ih"].shape
    H = H3 // 3
    SEQ = D // EMB
    assert SEQ * EMB == D

    VPAD = ((VOCAB + 127) // 128) * 128
    GP = max(GATE_PAD, ((H + 127) // 128) * 128)

    # Block-diagonal embedding so the in-kernel one-hot matmul writes each token's
    # embedding at its flattened (seq-major) slot of x.
    emb_blk = jnp.zeros((SEQ * VPAD, D), f32)
    for s in range(SEQ):
        emb_blk = emb_blk.at[s * VPAD:s * VPAD + VOCAB, s * EMB:(s + 1) * EMB].set(emb)

    w_ih = params["w_ih"].astype(f32)
    w_hh = params["w_hh"].astype(f32)
    b_ih = params["b_ih"].astype(f32)
    b_hh = params["b_hh"].astype(f32)

    # Fused gate weight: [x | h] @ wg = [gi_r+gh_r | gi_z+gh_z | gi_n | gh_n],
    # each gate block padded to GP lanes.
    wg = jnp.zeros((D + H, 4 * GP), f32)
    wg = wg.at[:D, 0:H].set(w_ih[0:H].T)
    wg = wg.at[D:, 0:H].set(w_hh[0:H].T)
    wg = wg.at[:D, GP:GP + H].set(w_ih[H:2 * H].T)
    wg = wg.at[D:, GP:GP + H].set(w_hh[H:2 * H].T)
    wg = wg.at[:D, 2 * GP:2 * GP + H].set(w_ih[2 * H:3 * H].T)
    wg = wg.at[D:, 3 * GP:3 * GP + H].set(w_hh[2 * H:3 * H].T)

    bg = jnp.zeros((1, 4 * GP), f32)
    bg = bg.at[0, 0:H].set(b_ih[0:H] + b_hh[0:H])
    bg = bg.at[0, GP:GP + H].set(b_ih[H:2 * H] + b_hh[H:2 * H])
    bg = bg.at[0, 2 * GP:2 * GP + H].set(b_ih[2 * H:3 * H])
    bg = bg.at[0, 3 * GP:3 * GP + H].set(b_hh[2 * H:3 * H])

    # fc1: hidden part as a matmul, tag column + bias as a (2, 128) VPU operand.
    w1 = params["fc1_w"].astype(f32)                       # (20, H+1)
    w1h = jnp.zeros((H, FC1_PAD), f32).at[:, :FC1_DIM].set(w1[:, :H].T)
    w1tb = jnp.zeros((2, FC1_PAD), f32)
    w1tb = w1tb.at[0, :FC1_DIM].set(w1[:, H])
    w1tb = w1tb.at[1, :FC1_DIM].set(params["fc1_b"].astype(f32))

    # fc2: zero-padded lane-dense 128-wide output slab.
    w2 = params["fc2_w"].astype(f32).T                     # (20, 2)
    w2p = jnp.zeros((FC1_PAD, OUT_PAD), f32).at[:FC1_DIM, :OUT_DIM].set(w2)
    b2p = jnp.zeros((1, OUT_PAD), f32).at[0, :OUT_DIM].set(params["fc2_b"].astype(f32))

    return {"emb_blk": emb_blk, "wg": wg, "bg": bg,
            "w1h": w1h, "w1tb": w1tb, "w2p": w2p, "b2p": b2p}


def net_forward(batch_idx, tag, hidden, kp):
    # Every size below is a static Python int derived from array shapes (jit-safe).
    B, SEQ = batch_idx.shape
    H = hidden.shape[-1]
    B_PAD = ((B + SUBLANE - 1) // SUBLANE) * SUBLANE
    pad = B_PAD - B

    idx_p = jnp.pad(batch_idx.astype(jnp.int32), ((0, pad), (0, 0)))
    h_p = jnp.pad(hidden.reshape(B, H).astype(jnp.float32), ((0, pad), (0, 0)))
    tag_p = jnp.pad(tag.astype(jnp.float32), ((0, pad), (0, 0)))

    inputs = (idx_p, h_p, tag_p,
              kp["emb_blk"], kp["wg"], kp["bg"],
              kp["w1h"], kp["w1tb"], kp["w2p"], kp["b2p"])

    vmem = pl.BlockSpec(memory_space=pltpu.MemorySpace.VMEM)
    # TODO(synk): if this forward is driven by an outer recurrence over timesteps, fold
    #             that loop in as a grid axis marked "arbitrary" (constant index_maps keep
    #             the weights VMEM-resident, hidden state lives in a VMEM scratch).
    out_pad, h_new = pl.pallas_call(
        gru_mlp_kernel,
        out_shape=(jax.ShapeDtypeStruct((B_PAD, OUT_PAD), jnp.float32),
                   jax.ShapeDtypeStruct((B_PAD, H), jnp.float32)),
        in_specs=[vmem] * len(inputs),
        out_specs=(vmem, vmem),
        # Safe: h_p is always a fresh padded temp under jit, never a caller buffer.
        input_output_aliases={1: 1},
    )(*inputs)

    return out_pad[:B, :OUT_DIM], h_new[:B].reshape(1, B, H)


def reference(batch_idx, tag, hidden, params):
    # Pure-JAX (f32) reproduction of the PyTorch forward, for verification.
    B = batch_idx.shape[0]
    x = params["embedding"][batch_idx].reshape(B, -1)
    h = hidden[0]
    H = h.shape[1]
    gi = x @ params["w_ih"].T + params["b_ih"]
    gh = h @ params["w_hh"].T + params["b_hh"]
    r = jax.nn.sigmoid(gi[:, :H] + gh[:, :H])
    z = jax.nn.sigmoid(gi[:, H:2 * H] + gh[:, H:2 * H])
    n = jnp.tanh(gi[:, 2 * H:] + r * gh[:, 2 * H:])
    hn = (1.0 - z) * n + z * h
    cat = jnp.concatenate([hn, tag], axis=1)
    a1 = cat @ params["fc1_w"].T + params["fc1_b"]
    a1 = jnp.where(a1 > 0, a1, 0.01 * a1)
    out = a1 @ params["fc2_w"].T + params["fc2_b"]
    return out, hn[None]


def init_params(key, vocab_size, seq_length, embedding_size, hidden_size, padding_idx):
    D = seq_length * embedding_size
    H = hidden_size
    ks = jax.random.split(key, 9)

    def unif(k, shape, fan):
        bound = 1.0 / jnp.sqrt(fan)
        return jax.random.uniform(k, shape, jnp.float32, -bound, bound)

    emb = jax.random.normal(ks[0], (vocab_size, embedding_size), jnp.float32)
    emb = emb.at[padding_idx].set(0.0)                      # nn.Embedding padding_idx
    return {
        "embedding": emb,
        "w_ih": unif(ks[1], (3 * H, D), H),
        "w_hh": unif(ks[2], (3 * H, H), H),
        "b_ih": unif(ks[3], (3 * H,), H),
        "b_hh": unif(ks[4], (3 * H,), H),
        "fc1_w": unif(ks[5], (FC1_DIM, H + 1), H + 1),
        "fc1_b": unif(ks[6], (FC1_DIM,), H + 1),
        "fc2_w": unif(ks[7], (OUT_DIM, FC1_DIM), FC1_DIM),
        "fc2_b": unif(ks[8], (OUT_DIM,), FC1_DIM),
    }


if __name__ == "__main__":
    VOCAB, SEQ, EMB, HIDDEN, PAD_IDX = 50, 8, 4, 32, 0
    BATCH = 2

    key = jax.random.PRNGKey(0)
    kp_, kb, kt = jax.random.split(key, 3)
    params = init_params(kp_, VOCAB, SEQ, EMB, HIDDEN, PAD_IDX)
    kparams = prepare_params(params)            # one-time weight re-layout (hoisted)

    batch_idx = jax.random.randint(kb, (BATCH, SEQ), 0, VOCAB, dtype=jnp.int32)
    tag = jax.random.normal(kt, (BATCH, 1), jnp.float32)
    hidden = jnp.zeros((1, BATCH, HIDDEN), jnp.float32)     # init_hidden

    fwd = jax.jit(net_forward)
    out, h_new = fwd(batch_idx, tag, hidden, kparams)
    out = jax.block_until_ready(out)
    h_new = jax.block_until_ready(h_new)

    out_ref, h_ref = reference(batch_idx, tag, hidden, params)
    assert out.shape == (BATCH, OUT_DIM) and h_new.shape == (1, BATCH, HIDDEN)
    # f32 end-to-end -> tight tolerance.
    assert jnp.allclose(out, out_ref, atol=1e-4, rtol=1e-4)
    assert jnp.allclose(h_new, h_ref, atol=1e-4, rtol=1e-4)
    print("KERNEL_OK")
</pallas_src>

<mosaic_0001>
module attributes {stable_mosaic.version = 11 : i64} {
  func.func @gru_mlp_kernel(%arg0: memref<8x8xi32, #tpu.memory_space<vmem>>, %arg1: memref<8x32xf32, #tpu.memory_space<vmem>>, %arg2: memref<8x1xf32, #tpu.memory_space<vmem>>, %arg3: memref<1024x32xf32, #tpu.memory_space<vmem>>, %arg4: memref<64x512xf32, #tpu.memory_space<vmem>>, %arg5: memref<1x512xf32, #tpu.memory_space<vmem>>, %arg6: memref<32x128xf32, #tpu.memory_space<vmem>>, %arg7: memref<2x128xf32, #tpu.memory_space<vmem>>, %arg8: memref<128x128xf32, #tpu.memory_space<vmem>>, %arg9: memref<1x128xf32, #tpu.memory_space<vmem>>, %arg10: memref<8x128xf32, #tpu.memory_space<vmem>>, %arg11: memref<8x32xf32, #tpu.memory_space<vmem>>) attributes {dimension_semantics = [], scalar_prefetch = 0 : i64, scratch_operands = 0 : i64, tpu.core_type = #tpu.core_type<tc>} {
    %c0 = arith.constant 0 : index
    %c0_0 = arith.constant 0 : index
    %0 = vector.load %arg0[%c0, %c0_0] : memref<8x8xi32, #tpu.memory_space<vmem>>, vector<8x8xi32>
    %1 = tpu.iota {dimensions = array<i32: 1>} : vector<8x128xi32>
    %2 = vector.extract_strided_slice %0 {offsets = [0, 0], sizes = [8, 1], strides = [1, 1]} : vector<8x8xi32> to vector<8x1xi32>
    %3 = vector.broadcast %2 : vector<8x1xi32> to vector<8x128xi32>
    %4 = arith.cmpi eq, %3, %1 : vector<8x128xi32>
    %5 = arith.extui %4 : vector<8x128xi1> to vector<8x128xi32>
    %6 = arith.sitofp %5 : vector<8x128xi32> to vector<8x128xf32>
    %7 = vector.extract_strided_slice %0 {offsets = [0, 1], sizes = [8, 1], strides = [1, 1]} : vector<8x8xi32> to vector<8x1xi32>
    %8 = vector.broadcast %7 : vector<8x1xi32> to vector<8x128xi32>
    %9 = arith.cmpi eq, %8, %1 : vector<8x128xi32>
    %10 = arith.extui %9 : vector<8x128xi1> to vector<8x128xi32>
    %11 = arith.sitofp %10 : vector<8x128xi32> to vector<8x128xf32>
    %12 = vector.extract_strided_slice %0 {offsets = [0, 2], sizes = [8, 1], strides = [1, 1]} : vector<8x8xi32> to vector<8x1xi32>
    %13 = vector.broadcast %12 : vector<8x1xi32> to vector<8x128xi32>
    %14 = arith.cmpi eq, %13, %1 : vector<8x128xi32>
    %15 = arith.extui %14 : vector<8x128xi1> to vector<8x128xi32>
    %16 = arith.sitofp %15 : vector<8x128xi32> to vector<8x128xf32>
    %17 = vector.extract_strided_slice %0 {offsets = [0, 3], sizes = [8, 1], strides = [1, 1]} : vector<8x8xi32> to vector<8x1xi32>
    %18 = vector.broadcast %17 : vector<8x1xi32> to vector<8x128xi32>
    %19 = arith.cmpi eq, %18, %1 : vector<8x128xi32>
    %20 = arith.extui %19 : vector<8x128xi1> to vector<8x128xi32>
    %21 = arith.sitofp %20 : vector<8x128xi32> to vector<8x128xf32>
    %22 = vector.extract_strided_slice %0 {offsets = [0, 4], sizes = [8, 1], strides = [1, 1]} : vector<8x8xi32> to vector<8x1xi32>
    %23 = vector.broadcast %22 : vector<8x1xi32> to vector<8x128xi32>
    %24 = arith.cmpi eq, %23, %1 : vector<8x128xi32>
    %25 = arith.extui %24 : vector<8x128xi1> to vector<8x128xi32>
    %26 = arith.sitofp %25 : vector<8x128xi32> to vector<8x128xf32>
    %27 = vector.extract_strided_slice %0 {offsets = [0, 5], sizes = [8, 1], strides = [1, 1]} : vector<8x8xi32> to vector<8x1xi32>
    %28 = vector.broadcast %27 : vector<8x1xi32> to vector<8x128xi32>
    %29 = arith.cmpi eq, %28, %1 : vector<8x128xi32>
    %30 = arith.extui %29 : vector<8x128xi1> to vector<8x128xi32>
    %31 = arith.sitofp %30 : vector<8x128xi32> to vector<8x128xf32>
    %32 = vector.extract_strided_slice %0 {offsets = [0, 6], sizes = [8, 1], strides = [1, 1]} : vector<8x8xi32> to vector<8x1xi32>
    %33 = vector.broadcast %32 : vector<8x1xi32> to vector<8x128xi32>
    %34 = arith.cmpi eq, %33, %1 : vector<8x128xi32>
    %35 = arith.extui %34 : vector<8x128xi1> to vector<8x128xi32>
    %36 = arith.sitofp %35 : vector<8x128xi32> to vector<8x128xf32>
    %37 = vector.extract_strided_slice %0 {offsets = [0, 7], sizes = [8, 1], strides = [1, 1]} : vector<8x8xi32> to vector<8x1xi32>
    %38 = vector.broadcast %37 : vector<8x1xi32> to vector<8x128xi32>
    %39 = arith.cmpi eq, %38, %1 : vector<8x128xi32>
    %40 = arith.extui %39 : vector<8x128xi1> to vector<8x128xi32>
    %41 = arith.sitofp %40 : vector<8x128xi32> to vector<8x128xf32>
    %42 = tpu.concatenate %6, %11, %16, %21, %26, %31, %36, %41 in 1 : vector<8x128xf32>, vector<8x128xf32>, vector<8x128xf32>, vector<8x128xf32>, vector<8x128xf32>, vector<8x128xf32>, vector<8x128xf32>, vector<8x128xf32> -> vector<8x1024xf32>
    %c0_1 = arith.constant 0 : index
    %c0_2 = arith.constant 0 : index
    %43 = vector.load %arg3[%c0_1, %c0_2] : memref<1024x32xf32, #tpu.memory_space<vmem>>, vector<1024x32xf32>
    %cst = arith.constant dense<0.000000e+00> : vector<8x32xf32>
    %44 = tpu.matmul %42, %43, %cst {dimension_numbers = #tpu.dot_dimension_numbers<[1], [0], [0], [1], [0, 0, 1, 1], [], []>} : vector<8x1024xf32>, vector<1024x32xf32>, vector<8x32xf32> -> vector<8x32xf32>
    %c0_3 = arith.constant 0 : index
    %c0_4 = arith.constant 0 : index
    %45 = vector.load %arg1[%c0_3, %c0_4] : memref<8x32xf32, #tpu.memory_space<vmem>>, vector<8x32xf32>
    %46 = tpu.concatenate %44, %45 in 1 : vector<8x32xf32>, vector<8x32xf32> -> vector<8x64xf32>
    %c0_5 = arith.constant 0 : index
    %c0_6 = arith.constant 0 : index
    %47 = vector.load %arg4[%c0_5, %c0_6] : memref<64x512xf32, #tpu.memory_space<vmem>>, vector<64x512xf32>
    %cst_7 = arith.constant dense<0.000000e+00> : vector<8x512xf32>
    %48 = tpu.matmul %46, %47, %cst_7 {dimension_numbers = #tpu.dot_dimension_numbers<[1], [0], [0], [1], [0, 0, 1, 1], [], []>} : vector<8x64xf32>, vector<64x512xf32>, vector<8x512xf32> -> vector<8x512xf32>
    %c0_8 = arith.constant 0 : index
    %c0_9 = arith.constant 0 : index
    %49 = vector.load %arg5[%c0_8, %c0_9] : memref<1x512xf32, #tpu.memory_space<vmem>>, vector<1x512xf32>
    %50 = vector.broadcast %49 : vector<1x512xf32> to vector<8x512xf32>
    %51 = arith.addf %48, %50 : vector<8x512xf32>
    %52 = vector.extract_strided_slice %51 {offsets = [0, 0], sizes = [8, 128], strides = [1, 1]} : vector<8x512xf32> to vector<8x128xf32>
    %53 = arith.negf %52 : vector<8x128xf32>
    %54 = math.exp %53 : vector<8x128xf32>
    %cst_10 = arith.constant 1.000000e+00 : f32
    %55 = vector.broadcast %cst_10 : f32 to vector<8x128xf32>
    %56 = arith.addf %55, %54 : vector<8x128xf32>
    %57 = arith.divf %55, %56 : vector<8x128xf32>
    %58 = vector.extract_strided_slice %51 {offsets = [0, 128], sizes = [8, 128], strides = [1, 1]} : vector<8x512xf32> to vector<8x128xf32>
    %59 = arith.negf %58 : vector<8x128xf32>
    %60 = math.exp %59 : vector<8x128xf32>
    %cst_11 = arith.constant 1.000000e+00 : f32
    %61 = vector.broadcast %cst_11 : f32 to vector<8x128xf32>
    %62 = arith.addf %61, %60 : vector<8x128xf32>
    %63 = arith.divf %61, %62 : vector<8x128xf32>
    %64 = vector.extract_strided_slice %51 {offsets = [0, 256], sizes = [8, 128], strides = [1, 1]} : vector<8x512xf32> to vector<8x128xf32>
    %65 = vector.extract_strided_slice %51 {offsets = [0, 384], sizes = [8, 128], strides = [1, 1]} : vector<8x512xf32> to vector<8x128xf32>
    %66 = arith.mulf %57, %65 : vector<8x128xf32>
    %67 = arith.addf %64, %66 : vector<8x128xf32>
    %68 = math.tanh %67 : vector<8x128xf32>
    %69 = vector.extract_strided_slice %68 {offsets = [0, 0], sizes = [8, 32], strides = [1, 1]} : vector<8x128xf32> to vector<8x32xf32>
    %70 = vector.extract_strided_slice %63 {offsets = [0, 0], sizes = [8, 32], strides = [1, 1]} : vector<8x128xf32> to vector<8x32xf32>
    %71 = vector.extract_strided_slice %68 {offsets = [0, 0], sizes = [8, 32], strides = [1, 1]} : vector<8x128xf32> to vector<8x32xf32>
    %72 = arith.subf %45, %71 : vector<8x32xf32>
    %73 = arith.mulf %70, %72 : vector<8x32xf32>
    %74 = arith.addf %69, %73 : vector<8x32xf32>
    %c0_12 = arith.constant 0 : index
    %c0_13 = arith.constant 0 : index
    %75 = vector.load %arg11[%c0_12, %c0_13] : memref<8x32xf32, #tpu.memory_space<vmem>>, vector<8x32xf32>
    tpu.vector_store %arg11[%c0_12, %c0_13], %74 {strides = array<i32>} : memref<8x32xf32, #tpu.memory_space<vmem>>, vector<8x32xf32>,
    %c0_14 = arith.constant 0 : index
    %c0_15 = arith.constant 0 : index
    %76 = vector.load %arg6[%c0_14, %c0_15] : memref<32x128xf32, #tpu.memory_space<vmem>>, vector<32x128xf32>
    %cst_16 = arith.constant dense<0.000000e+00> : vector<8x128xf32>
    %77 = tpu.matmul %74, %76, %cst_16 {dimension_numbers = #tpu.dot_dimension_numbers<[1], [0], [0], [1], [0, 0, 1, 1], [], []>} : vector<8x32xf32>, vector<32x128xf32>, vector<8x128xf32> -> vector<8x128xf32>
    %c0_17 = arith.constant 0 : index
    %c0_18 = arith.constant 0 : index
    %78 = vector.load %arg2[%c0_17, %c0_18] : memref<8x1xf32, #tpu.memory_space<vmem>>, vector<8x1xf32>
    %c0_19 = arith.constant 0 : index
    %c0_20 = arith.constant 0 : index
    %79 = vector.load %arg7[%c0_19, %c0_20] : memref<2x128xf32, #tpu.memory_space<vmem>>, vector<1x128xf32>
    %80 = vector.broadcast %78 : vector<8x1xf32> to vector<8x128xf32>
    %81 = vector.broadcast %79 : vector<1x128xf32> to vector<8x128xf32>
    %82 = arith.mulf %80, %81 : vector<8x128xf32>
    %83 = arith.addf %77, %82 : vector<8x128xf32>
    %c1 = arith.constant 1 : index
    %c0_21 = arith.constant 0 : index
    %84 = vector.load %arg7[%c1, %c0_21] : memref<2x128xf32, #tpu.memory_space<vmem>>, vector<1x128xf32>
    %85 = vector.broadcast %84 : vector<1x128xf32> to vector<8x128xf32>
    %86 = arith.addf %83, %85 : vector<8x128xf32>
    %cst_22 = arith.constant 0.000000e+00 : f32
    %87 = vector.broadcast %cst_22 : f32 to vector<8x128xf32>
    %88 = arith.cmpf ogt, %86, %87 : vector<8x128xf32>
    %cst_23 = arith.constant 0.00999999977 : f32
    %89 = vector.broadcast %cst_23 : f32 to vector<8x128xf32>
    %90 = arith.mulf %89, %86 : vector<8x128xf32>
    %91 = arith.select %88, %86, %90 : vector<8x128xi1>, vector<8x128xf32>
    %c0_24 = arith.constant 0 : index
    %c0_25 = arith.constant 0 : index
    %92 = vector.load %arg8[%c0_24, %c0_25] : memref<128x128xf32, #tpu.memory_space<vmem>>, vector<128x128xf32>
    %cst_26 = arith.constant dense<0.000000e+00> : vector<8x128xf32>
    %93 = tpu.matmul %91, %92, %cst_26 {dimension_numbers = #tpu.dot_dimension_numbers<[1], [0], [0], [1], [0, 0, 1, 1], [], []>} : vector<8x128xf32>, vector<128x128xf32>, vector<8x128xf32> -> vector<8x128xf32>
    %c0_27 = arith.constant 0 : index
    %c0_28 = arith.constant 0 : index
    %94 = vector.load %arg9[%c0_27, %c0_28] : memref<1x128xf32, #tpu.memory_space<vmem>>, vector<1x128xf32>
    %95 = vector.broadcast %94 : vector<1x128xf32> to vector<8x128xf32>
    %96 = arith.addf %93, %95 : vector<8x128xf32>
    %c0_29 = arith.constant 0 : index
    %c0_30 = arith.constant 0 : index
    %97 = vector.load %arg10[%c0_29, %c0_30] : memref<8x128xf32, #tpu.memory_space<vmem>>, vector<8x128xf32>
    tpu.vector_store %arg10[%c0_29, %c0_30], %96 {strides = array<i32>} : memref<8x128xf32, #tpu.memory_space<vmem>>, vector<8x128xf32>,
    return
  }
}

</mosaic_0001>

<bundles_post_ra>
// kernel: net_forward.1
= control target key start
LH: loop header
LB: loop body
LE: loop exit
PB: predicated region body
PF: predicated region fallthrough
CT: control target
= control target key end

     0   :  { %v700_v0 = vmov 3   ;;  %v701_v1 = vmov 2   ;;  %v702_v5 = vmov 6   ;;  %v703_v17 = vmov 1   ;;  %s708_s17 = smov 32   ;;  %s1362_s0 = inlined_call_operand.vmem [shape: s32[8,8], index: 0, kind: input, shape index: {}]   ;;  %s1363_s3 = inlined_call_operand.vmem [shape: f32[1024,32], index: 3, kind: input, shape index: {}]   ;;  %s1364_s1 = inlined_call_operand.vmem [shape: f32[8,32], index: 1, kind: input, shape index: {}, may-alias: {1,11}]   ;;  %s1365_s4 = inlined_call_operand.vmem [shape: f32[64,512], index: 4, kind: input, shape index: {}]   ;;  %s1366_s7 = inlined_call_operand.vmem [shape: f32[2,128], index: 7, kind: input, shape index: {}]   ;;  %s1367_s5 = inlined_call_operand.vmem [shape: f32[1,512], index: 5, kind: input, shape index: {}]   ;;  %s1368_s6 = inlined_call_operand.vmem [shape: f32[32,128], index: 6, kind: input, shape index: {}]   ;;  %s1369_s2 = inlined_call_operand.vmem [shape: f32[8,1], index: 2, kind: input, shape index: {}]   ;;  %s1370_s8 = inlined_call_operand.vmem [shape: f32[128,128], index: 8, kind: input, shape index: {}]   ;;  %s1371_s11 = inlined_call_operand.vmem [shape: f32[8,32], index: 11, kind: output, shape index: {1}, may-alias: {1,11}]   ;;  %s1372_s9 = inlined_call_operand.vmem [shape: f32[1,128], index: 9, kind: input, shape index: {}]   ;;  %s1373_s10 = inlined_call_operand.vmem [shape: f32[8,128], index: 10, kind: output, shape index: {0}]  }
   0x1   :  { %680 = vset.pattern.permute.xlu1 %v700_v0  ;;  %678 = vset.pattern.permute.xlu0 %v701_v1  ;;  %v773_v2 = vld [vmem:[%s1362_s0] sm:$0xff]  ;;  %v135_v3 = vld [vmem:[%s1363_s3 + $0x178] sm:$0xff]  ;;  %v134_v4 = vld [vmem:[%s1363_s3 + $0x170] sm:$0xff]  ;;  %v704_v18 = vmov 0   ;;  %v705_v22 = vmov 4   ;;  %v706_v34 = vmov 7  }
   0x2   :  { %59 = vperm.xlu1 %680, %v773_v2   ;;  %53 = vperm.xlu0 %678, %v773_v2   ;;  %v133_v6 = vld [vmem:[%s1363_s3 + $0x168] sm:$0xff]  ;;  %v103_v7 = vld [vmem:[%s1363_s3 + $0x78] sm:$0xff]  ;;  %v102_v9 = vld [vmem:[%s1363_s3 + $0x70] sm:$0xff]  ;;  %v707_v38 = vmov 5   ;;  %vm381_vm8 = vcmask 261120   ;;  %vm425_vm9 = vcmask 523264  }
   0x3   :  { %682 = vset.pattern.permute.xlu2 %v702_v5  ;;  %256 = vmatpush.msra.mxu2 %v135_v3  ;;  %v151_v8 = vld [vmem:[%s1363_s3 + $0x1f8] sm:$0xff]  ;;  %v150_v11 = vld [vmem:[%s1363_s3 + $0x1f0] sm:$0xff]  ;;  %v101_v12 = vld [vmem:[%s1363_s3 + $0x68] sm:$0xff] }
   0x4   :  { %77 = vperm.xlu2 %682, %v773_v2   ;;  %216 = vmatpush.msra.mxu0 %v103_v7  ;;  %v119_v10 = vld [vmem:[%s1363_s3 + $0xf8] sm:$0xff]  ;;  %v132_v13 = vld [vmem:[%s1363_s3 + $0x160] sm:$0xff]  ;;  %v118_v14 = vld [vmem:[%s1363_s3 + $0xf0] sm:$0xff] }
   0x5   :  { %257 = vmatpush.msra.mxu2 %v134_v4  ;;  %276 = vmatpush.msra.mxu3 %v151_v8  ;;  %v149_v15 = vld [vmem:[%s1363_s3 + $0x1e8] sm:$0xff]  ;;  %v131_v16 = vld [vmem:[%s1363_s3 + $0x158] sm:$0xff]  ;;  %v100_v19 = vld [vmem:[%s1363_s3 + $0x60] sm:$0xff] }
   0x6   :  { %217 = vmatpush.msra.mxu0 %v102_v9  ;;  %236 = vmatpush.msra.mxu1 %v119_v10  ;;  %v130_v20 = vld [vmem:[%s1363_s3 + $0x150] sm:$0xff]  ;;  %v117_v21 = vld [vmem:[%s1363_s3 + $0xe8] sm:$0xff]  ;;  %v148_v23 = vld [vmem:[%s1363_s3 + $0x1e0] sm:$0xff] }
   0x7   :  { %258 = vmatpush.msra.mxu2 %v133_v6  ;;  %277 = vmatpush.msra.mxu3 %v150_v11  ;;  %v99_v24 = vld [vmem:[%s1363_s3 + $0x58] sm:$0xff]  ;;  %v129_v25 = vld [vmem:[%s1363_s3 + $0x148] sm:$0xff]  ;;  %v116_v26 = vld [vmem:[%s1363_s3 + $0xe0] sm:$0xff] }
   0x8   :  { %218 = vmatpush.msra.mxu0 %v101_v12  ;;  %237 = vmatpush.msra.mxu1 %v118_v14  ;;  %v147_v27 = vld [vmem:[%s1363_s3 + $0x1d8] sm:$0xff]  ;;  %v98_v28 = vld [vmem:[%s1363_s3 + $0x50] sm:$0xff]  ;;  %v128_v29 = vld [vmem:[%s1363_s3 + $0x140] sm:$0xff] }
   0x9   :  { %259 = vmatpush.msra.mxu2 %v132_v13  ;;  %278 = vmatpush.msra.mxu3 %v149_v15  ;;  %v115_v30 = vld [vmem:[%s1363_s3 + $0xd8] sm:$0xff]  ;;  %v146_v31 = vld [vmem:[%s1363_s3 + $0x1d0] sm:$0xff]  ;;  %v97_v33 = vld [vmem:[%s1363_s3 + $0x48] sm:$0xff] }
   0xa   :  { %681 = vset.pattern.permute.xlu1 %v703_v17  ;;  %679 = vset.pattern.permute.xlu0 %v704_v18  ;;  %v127_v32 = vld [vmem:[%s1363_s3 + $0x138] sm:$0xff]  ;;  %v126_v35 = vld [vmem:[%s1363_s3 + $0x130] sm:$0xff]  ;;  %v145_v37 = vld [vmem:[%s1363_s3 + $0x1c8] sm:$0xff] }
   0xb   :  { %47 = vperm.xlu1 %681, %v773_v2   ;;  %41 = vperm.xlu0 %679, %v773_v2   ;;  %v114_v36 = vld [vmem:[%s1363_s3 + $0xd0] sm:$0xff]  ;;  %v125_v39 = vld [vmem:[%s1363_s3 + $0x128] sm:$0xff]  ;;  %v96_v40 = vld [vmem:[%s1363_s3 + $0x40] sm:$0xff] }
   0xc   :  { %683 = vset.pattern.permute.xlu2 %v705_v22  ;;  %260 = vmatpush.msra.mxu2 %v131_v16  ;;  %v113_v41 = vld [vmem:[%s1363_s3 + $0xc8] sm:$0xff]  ;;  %v144_v42 = vld [vmem:[%s1363_s3 + $0x1c0] sm:$0xff]  ;;  %v95_v44 = vld [vmem:[%s1363_s3 + $0x38] sm:$0xff] }
   0xd   :  { %65 = vperm.xlu2 %683, %v773_v2   ;;  %219 = vmatpush.msra.mxu0 %v100_v19  ;;  %v124_v43 = vld [vmem:[%s1363_s3 + $0x120] sm:$0xff]  ;;  %v143_v46 = vld [vmem:[%s1363_s3 + $0x1b8] sm:$0xff]  ;;  %v94_v48 = vld [vmem:[%s1363_s3 + $0x30] sm:$0xff] }
   0xe   :  { %261 = vmatpush.msra.mxu2 %v130_v20  ;;  %238 = vmatpush.msra.mxu1 %v117_v21  ;;  %v112_v45 = vld [vmem:[%s1363_s3 + $0xc0] sm:$0xff]  ;;  %v123_v47 = vld [vmem:[%s1363_s3 + $0x118] sm:$0xff]  ;;  %v142_v50 = vld [vmem:[%s1363_s3 + $0x1b0] sm:$0xff] }
   0xf   :  { %279 = vmatpush.msra.mxu3 %v148_v23  ;;  %220 = vmatpush.msra.mxu0 %v99_v24  ;;  %v111_v49 = vld [vmem:[%s1363_s3 + $0xb8] sm:$0xff]  ;;  %v122_v51 = vld [vmem:[%s1363_s3 + $0x110] sm:$0xff]  ;;  %v93_v52 = vld [vmem:[%s1363_s3 + $0x28] sm:$0xff] }
  0x10   :  { %262 = vmatpush.msra.mxu2 %v129_v25  ;;  %239 = vmatpush.msra.mxu1 %v116_v26  ;;  %v110_v53 = vld [vmem:[%s1363_s3 + $0xb0] sm:$0xff]  ;;  %v141_v54 = vld [vmem:[%s1363_s3 + $0x1a8] sm:$0xff]  ;;  %v92_v56 = vld [vmem:[%s1363_s3 + $0x20] sm:$0xff] }
  0x11   :  { %280 = vmatpush.msra.mxu3 %v147_v27  ;;  %221 = vmatpush.msra.mxu0 %v98_v28  ;;  %v121_v55 = vld [vmem:[%s1363_s3 + $0x108] sm:$0xff]  ;;  %v140_v58 = vld [vmem:[%s1363_s3 + $0x1a0] sm:$0xff]  ;;  %v91_v60 = vld [vmem:[%s1363_s3 + $0x18] sm:$0xff] }
  0x12   :  { %263 = vmatpush.msra.mxu2 %v128_v29  ;;  %240 = vmatpush.msra.mxu1 %v115_v30  ;;  %v109_v57 = vld [vmem:[%s1363_s3 + $0xa8] sm:$0xff]  ;;  %v120_v59 = vld [vmem:[%s1363_s3 + $0x100] sm:$0xff]  ;;  %v199_v61 = vld [vmem:[%s1363_s3 + $0x378] sm:$0xff] }
  0x13   :  { %684 = vset.pattern.permute.xlu1 %v706_v34  ;;  %281 = vmatpush.msra.mxu3 %v146_v31  ;;  %v108_v62 = vld [vmem:[%s1363_s3 + $0xa0] sm:$0xff]  ;;  %v139_v63 = vld [vmem:[%s1363_s3 + $0x198] sm:$0xff]  ;;  %v90_v0 = vld [vmem:[%s1363_s3 + $0x10] sm:$0xff] }
  0x14   :  { %83 = vperm.xlu1 %684, %v773_v2   ;;  %264 = vmatpush.msra.mxu2 %v127_v32  ;;  %v198_v1 = vld [vmem:[%s1363_s3 + $0x370] sm:$0xff]  ;;  %v89_v4 = vld [vmem:[%s1363_s3 + $0x8] sm:$0xff]  ;;  %v88_v8 = vld [vmem:[%s1363_s3] sm:$0xff] }
  0x15   :  { %685 = vset.pattern.permute.xlu2 %v707_v38  ;;  %222 = vmatpush.msra.mxu0 %v97_v33  ;;  %v138_v3 = vld [vmem:[%s1363_s3 + $0x190] sm:$0xff]  ;;  %v197_v5 = vld [vmem:[%s1363_s3 + $0x368] sm:$0xff]  ;;  %v196_v9 = vld [vmem:[%s1363_s3 + $0x360] sm:$0xff] }
  0x16   :  { %71 = vperm.xlu2 %685, %v773_v2   ;;  %265 = vmatpush.msra.mxu2 %v126_v35  ;;  %v107_v2 = vld [vmem:[%s1363_s3 + $0x98] sm:$0xff]  ;;  %v106_v6 = vld [vmem:[%s1363_s3 + $0x90] sm:$0xff]  ;;  %v137_v7 = vld [vmem:[%s1363_s3 + $0x188] sm:$0xff] }
  0x17   :  { %241 = vmatpush.msra.mxu1 %v114_v36  ;;  %282 = vmatpush.msra.mxu3 %v145_v37  ;;  %v105_v10 = vld [vmem:[%s1363_s3 + $0x88] sm:$0xff]  ;;  %v136_v11 = vld [vmem:[%s1363_s3 + $0x180] sm:$0xff]  ;;  %v167_v12 = vld [vmem:[%s1363_s3 + $0x278] sm:$0xff] }
  0x18   :  { %266 = vmatpush.msra.mxu2 %v125_v39  ;;  %223 = vmatpush.msra.mxu0 %v96_v40  ;;  %v195_v13 = vld [vmem:[%s1363_s3 + $0x358] sm:$0xff]  ;;  %v104_v14 = vld [vmem:[%s1363_s3 + $0x80] sm:$0xff]  ;;  %v166_v16 = vld [vmem:[%s1363_s3 + $0x270] sm:$0xff] }
  0x19   :  { %242 = vmatpush.msra.mxu1 %v113_v41  ;;  %283 = vmatpush.msra.mxu3 %v144_v42  ;;  %v215_v15 = vld [vmem:[%s1363_s3 + $0x3f8] sm:$0xff]  ;;  %v194_v17 = vld [vmem:[%s1363_s3 + $0x350] sm:$0xff]  ;;  %v165_v21 = vld [vmem:[%s1363_s3 + $0x268] sm:$0xff] }
  0x1a   :  { %267 = vmatpush.msra.mxu2 %v124_v43  ;;  %224 = vmatpush.msra.mxu0 %v95_v44  ;;  %v183_v19 = vld [vmem:[%s1363_s3 + $0x2f8] sm:$0xff]  ;;  %v214_v20 = vld [vmem:[%s1363_s3 + $0x3f0] sm:$0xff]  ;;  %v193_v22 = vld [vmem:[%s1363_s3 + $0x348] sm:$0xff] }
  0x1b   :  { %243 = vmatpush.msra.mxu1 %v112_v45  ;;  %284 = vmatpush.msra.mxu3 %v143_v46  ;;  %v182_v23 = vld [vmem:[%s1363_s3 + $0x2f0] sm:$0xff]  ;;  %v213_v24 = vld [vmem:[%s1363_s3 + $0x3e8] sm:$0xff]  ;;  %v164_v25 = vld [vmem:[%s1363_s3 + $0x260] sm:$0xff] }
  0x1c   :  { %268 = vmatpush.msra.mxu2 %v123_v47  ;;  %225 = vmatpush.msra.mxu0 %v94_v48  ;;  %v192_v26 = vld [vmem:[%s1363_s3 + $0x340] sm:$0xff]  ;;  %v181_v27 = vld [vmem:[%s1363_s3 + $0x2e8] sm:$0xff]  ;;  %v163_v29 = vld [vmem:[%s1363_s3 + $0x258] sm:$0xff] }
  0x1d   :  { %244 = vmatpush.msra.mxu1 %v111_v49  ;;  %285 = vmatpush.msra.mxu3 %v142_v50  ;;  %v212_v28 = vld [vmem:[%s1363_s3 + $0x3e0] sm:$0xff]  ;;  %v191_v30 = vld [vmem:[%s1363_s3 + $0x338] sm:$0xff]  ;;  %v162_v33 = vld [vmem:[%s1363_s3 + $0x250] sm:$0xff] }
  0x1e   :  { %269 = vmatpush.msra.mxu2 %v122_v51  ;;  %226 = vmatpush.msra.mxu0 %v93_v52  ;;  %v180_v31 = vld [vmem:[%s1363_s3 + $0x2e0] sm:$0xff]  ;;  %v211_v32 = vld [vmem:[%s1363_s3 + $0x3d8] sm:$0xff]  ;;  %v190_v34 = vld [vmem:[%s1363_s3 + $0x330] sm:$0xff] }
  0x1f   :  { %245 = vmatpush.msra.mxu1 %v110_v53  ;;  %286 = vmatpush.msra.mxu3 %v141_v54  ;;  %v179_v35 = vld [vmem:[%s1363_s3 + $0x2d8] sm:$0xff]  ;;  %v210_v36 = vld [vmem:[%s1363_s3 + $0x3d0] sm:$0xff]  ;;  %v161_v37 = vld [vmem:[%s1363_s3 + $0x248] sm:$0xff] }
  0x20   :  { %270 = vmatpush.msra.mxu2 %v121_v55  ;;  %227 = vmatpush.msra.mxu0 %v92_v56  ;;  %v189_v38 = vld [vmem:[%s1363_s3 + $0x328] sm:$0xff]  ;;  %v178_v39 = vld [vmem:[%s1363_s3 + $0x2d0] sm:$0xff]  ;;  %v188_v40 = vld [vmem:[%s1363_s3 + $0x320] sm:$0xff] }
  0x21   :  { %246 = vmatpush.msra.mxu1 %v109_v57  ;;  %287 = vmatpush.msra.mxu3 %v140_v58  ;;  %v209_v41 = vld [vmem:[%s1363_s3 + $0x3c8] sm:$0xff]  ;;  %v160_v42 = vld [vmem:[%s1363_s3 + $0x240] sm:$0xff]  ;;  %v159_v45 = vld [vmem:[%s1363_s3 + $0x238] sm:$0xff] }
  0x22   :  { %271 = vmatpush.msra.mxu2 %v120_v59  ;;  %228 = vmatpush.msra.mxu0 %v91_v60  ;;  %v177_v43 = vld [vmem:[%s1363_s3 + $0x2c8] sm:$0xff]  ;;  %v208_v44 = vld [vmem:[%s1363_s3 + $0x3c0] sm:$0xff]  ;;  %v186_v47 = vld [vmem:[%s1363_s3 + $0x310] sm:$0xff] }
  0x23   :  { %247 = vmatpush.msra.mxu1 %v108_v62  ;;  %288 = vmatpush.msra.mxu3 %v139_v63  ;;  %v176_v46 = vld [vmem:[%s1363_s3 + $0x2c0] sm:$0xff]  ;;  %v207_v48 = vld [vmem:[%s1363_s3 + $0x3b8] sm:$0xff]  ;;  %v158_v49 = vld [vmem:[%s1363_s3 + $0x230] sm:$0xff] }
  0x24   :  { %336 = vmatpush.msrb.mxu2 %v199_v61  ;;  %229 = vmatpush.msra.mxu0 %v90_v0  ;;  %v175_v50 = vld [vmem:[%s1363_s3 + $0x2b8] sm:$0xff]  ;;  %v185_v51 = vld [vmem:[%s1363_s3 + $0x308] sm:$0xff]  ;;  %v206_v52 = vld [vmem:[%s1363_s3 + $0x3b0] sm:$0xff] }
  0x25   :  { %248 = vmatpush.msra.mxu1 %v107_v2  ;;  %289 = vmatpush.msra.mxu3 %v138_v3  ;;  %v157_v53 = vld [vmem:[%s1363_s3 + $0x228] sm:$0xff]  ;;  %v174_v54 = vld [vmem:[%s1363_s3 + $0x2b0] sm:$0xff]  ;;  %v184_v55 = vld [vmem:[%s1363_s3 + $0x300] sm:$0xff] }
  0x26   :  { %337 = vmatpush.msrb.mxu2 %v198_v1  ;;  %230 = vmatpush.msra.mxu0 %v89_v4  ;;  %v205_v56 = vld [vmem:[%s1363_s3 + $0x3a8] sm:$0xff]  ;;  %v156_v57 = vld [vmem:[%s1363_s3 + $0x220] sm:$0xff]  ;;  %v155_v60 = vld [vmem:[%s1363_s3 + $0x218] sm:$0xff] }
  0x27   :  { %249 = vmatpush.msra.mxu1 %v106_v6  ;;  %290 = vmatpush.msra.mxu3 %v137_v7  ;;  %v173_v58 = vld [vmem:[%s1363_s3 + $0x2a8] sm:$0xff]  ;;  %v204_v59 = vld [vmem:[%s1363_s3 + $0x3a0] sm:$0xff]  ;;  %v203_v62 = vld [vmem:[%s1363_s3 + $0x398] sm:$0xff] }
  0x28   :  { %338 = vmatpush.msrb.mxu2 %v197_v5  ;;  %231 = vmatpush.msra.mxu0 %v88_v8  ;;  %v172_v61 = vld [vmem:[%s1363_s3 + $0x2a0] sm:$0xff]  ;;  %v154_v63 = vld [vmem:[%s1363_s3 + $0x210] sm:$0xff]  ;;  %v171_v0 = vld [vmem:[%s1363_s3 + $0x298] sm:$0xff] }
  0x29   :  { %250 = vmatpush.msra.mxu1 %v105_v10  ;;  %291 = vmatpush.msra.mxu3 %v136_v11  ;;  %v202_v1 = vld [vmem:[%s1363_s3 + $0x390] sm:$0xff]  ;;  %v153_v2 = vld [vmem:[%s1363_s3 + $0x208] sm:$0xff]  ;;  %v152_v5 = vld [vmem:[%s1363_s3 + $0x200] sm:$0xff]  ;;  %v38_v10 = vlaneseq }
  0x2a   :  { %339 = vmatpush.msrb.mxu2 %v196_v9  ;;  %296 = vmatpush.msrb.mxu0 %v167_v12  ;;  %v170_v3 = vld [vmem:[%s1363_s3 + $0x290] sm:$0xff]  ;;  %v201_v4 = vld [vmem:[%s1363_s3 + $0x388] sm:$0xff]  ;;  %v200_v7 = vld [vmem:[%s1363_s3 + $0x380] sm:$0xff] }
  0x2b   :  { %251 = vmatpush.msra.mxu1 %v104_v14  ;;  %356 = vmatpush.msrb.mxu3 %v215_v15  ;;  %v169_v6 = vld [vmem:[%s1363_s3 + $0x288] sm:$0xff]  ;;  %v168_v8 = vld [vmem:[%s1363_s3 + $0x280] sm:$0xff]  ;;  %v39_v12 = vand.u32 127, %v38_v10  ;;  %v709_v15 = vmov 1.0  }
  0x2c   :  { %340 = vmatpush.msrb.mxu2 %v195_v13  ;;  %297 = vmatpush.msrb.mxu0 %v166_v16  ;;  %v1172_v9 = vld [vmem:[%s1364_s1] sm:$0xff] }
  0x2d   :  { %316 = vmatpush.msrb.mxu1 %v183_v19  ;;  %357 = vmatpush.msrb.mxu3 %v214_v20 }
  0x2e   :  { %341 = vmatpush.msrb.mxu2 %v194_v17  ;;  %298 = vmatpush.msrb.mxu0 %v165_v21 }
  0x2f   :  { %317 = vmatpush.msrb.mxu1 %v182_v23  ;;  %358 = vmatpush.msrb.mxu3 %v213_v24  ;;  %v408_v23 = vld [vmem:[%s1365_s4 + $0xc8] sm:$0xff] }
  0x30   :  { %342 = vmatpush.msrb.mxu2 %v193_v22  ;;  %299 = vmatpush.msrb.mxu0 %v164_v25  ;;  %v412_v22 = vld [vmem:[%s1365_s4 + $0xe8] sm:$0xff] }
  0x31   :  { %318 = vmatpush.msrb.mxu1 %v181_v27  ;;  %359 = vmatpush.msrb.mxu3 %v212_v28  ;;  %v404_v24 = vld [vmem:[%s1365_s4 + $0xa8] sm:$0xff]  ;;  %v414_v27 = vld [vmem:[%s1365_s4 + $0xf8] sm:$0xff] }
  0x32   :  { %343 = vmatpush.msrb.mxu2 %v192_v26  ;;  %300 = vmatpush.msrb.mxu0 %v163_v29  ;;  %v400_v25 = vld [vmem:[%s1365_s4 + $0x88] sm:$0xff]  ;;  %v411_v26 = vld [vmem:[%s1365_s4 + $0xe0] sm:$0xff] }
  0x33   :  { %319 = vmatpush.msrb.mxu1 %v180_v31  ;;  %360 = vmatpush.msrb.mxu3 %v211_v32  ;;  %v396_v28 = vld [vmem:[%s1365_s4 + $0x68] sm:$0xff]  ;;  %v407_v29 = vld [vmem:[%s1365_s4 + $0xc0] sm:$0xff] }
  0x34   :  { %344 = vmatpush.msrb.mxu2 %v191_v30  ;;  %301 = vmatpush.msrb.mxu0 %v162_v33  ;;  %v410_v30 = vld [vmem:[%s1365_s4 + $0xd8] sm:$0xff]  ;;  %v392_v31 = vld [vmem:[%s1365_s4 + $0x48] sm:$0xff]  ;;  %v403_v32 = vld [vmem:[%s1365_s4 + $0xa0] sm:$0xff] }
  0x35   :  { %320 = vmatpush.msrb.mxu1 %v179_v35  ;;  %361 = vmatpush.msrb.mxu3 %v210_v36  ;;  %v406_v33 = vld [vmem:[%s1365_s4 + $0xb8] sm:$0xff]  ;;  %v399_v35 = vld [vmem:[%s1365_s4 + $0x80] sm:$0xff] }
  0x36   :  { %345 = vmatpush.msrb.mxu2 %v190_v34  ;;  %302 = vmatpush.msrb.mxu0 %v161_v37  ;;  %v388_v34 = vld [vmem:[%s1365_s4 + $0x28] sm:$0xff]  ;;  %v402_v36 = vld [vmem:[%s1365_s4 + $0x98] sm:$0xff] }
  0x37   :  { %321 = vmatpush.msrb.mxu1 %v178_v39  ;;  %686 = vset.pattern.permute.xlu1 %v704_v18  ;;  %v187_v18 = vld [vmem:[%s1363_s3 + $0x318] sm:$0xff]  ;;  %v384_v37 = vld [vmem:[%s1365_s4 + $0x8] sm:$0xff]  ;;  %v413_v39 = vld [vmem:[%s1365_s4 + $0xf0] sm:$0xff] }
  0x38   :  { %346 = vmatpush.msrb.mxu2 %v189_v38  ;;  %362 = vmatpush.msrb.mxu3 %v209_v41  ;;  %v395_v38 = vld [vmem:[%s1365_s4 + $0x60] sm:$0xff] }
  0x39   :  { %303 = vmatpush.msrb.mxu0 %v160_v42  ;;  %322 = vmatpush.msrb.mxu1 %v177_v43  ;;  %v391_v41 = vld [vmem:[%s1365_s4 + $0x40] sm:$0xff]  ;;  %v409_v42 = vld [vmem:[%s1365_s4 + $0xd0] sm:$0xff]  ;;  %v394_v43 = vld [vmem:[%s1365_s4 + $0x58] sm:$0xff] }
  0x3a   :  { %347 = vmatpush.msrb.mxu2 %v188_v40  ;;  %363 = vmatpush.msrb.mxu3 %v208_v44  ;;  %v398_v40 = vld [vmem:[%s1365_s4 + $0x78] sm:$0xff]  ;;  %v405_v44 = vld [vmem:[%s1365_s4 + $0xb0] sm:$0xff] }
  0x3b   :  { %304 = vmatpush.msrb.mxu0 %v159_v45  ;;  %323 = vmatpush.msrb.mxu1 %v176_v46  ;;  %v390_v45 = vld [vmem:[%s1365_s4 + $0x38] sm:$0xff]  ;;  %v383_v46 = vld [vmem:[%s1365_s4] sm:$0xff] }
  0x3c   :  { %348 = vmatpush.msrb.mxu2 %v187_v18  ;;  %364 = vmatpush.msrb.mxu3 %v207_v48  ;;  %v387_v18 = vld [vmem:[%s1365_s4 + $0x20] sm:$0xff]  ;;  %v386_v48 = vld [vmem:[%s1365_s4 + $0x18] sm:$0xff] }
  0x3d   :  { %305 = vmatpush.msrb.mxu0 %v158_v49  ;;  %324 = vmatpush.msrb.mxu1 %v175_v50  ;;  %v397_v49 = vld [vmem:[%s1365_s4 + $0x70] sm:$0xff] }
  0x3e   :  { %349 = vmatpush.msrb.mxu2 %v186_v47  ;;  %365 = vmatpush.msrb.mxu3 %v206_v52  ;;  %v401_v47 = vld [vmem:[%s1365_s4 + $0x90] sm:$0xff] }
  0x3f   :  { %306 = vmatpush.msrb.mxu0 %v157_v53  ;;  %325 = vmatpush.msrb.mxu1 %v174_v54  ;;  %v393_v50 = vld [vmem:[%s1365_s4 + $0x50] sm:$0xff] }
  0x40   :  { %350 = vmatpush.msrb.mxu2 %v185_v51  ;;  %366 = vmatpush.msrb.mxu3 %v205_v56  ;;  %v389_v51 = vld [vmem:[%s1365_s4 + $0x30] sm:$0xff] }
  0x41   :  { %307 = vmatpush.msrb.mxu0 %v156_v57  ;;  %326 = vmatpush.msrb.mxu1 %v173_v58  ;;  %v385_v52 = vld [vmem:[%s1365_s4 + $0x10] sm:$0xff] }
  0x42   :  { %351 = vmatpush.msrb.mxu2 %v184_v55  ;;  %367 = vmatpush.msrb.mxu3 %v204_v59 }
  0x43   :  { %308 = vmatpush.msrb.mxu0 %v155_v60  ;;  %327 = vmatpush.msrb.mxu1 %v172_v61 }
  0x44   :  { %368 = vmatpush.msrb.mxu3 %v203_v62  ;;  %378 = vrot.lane.b32.xlu0 %v1172_v9, %s708_s17 }
  0x45   :  { %309 = vmatpush.msrb.mxu0 %v154_v63  ;;  %328 = vmatpush.msrb.mxu1 %v171_v0 }
  0x46   :  { %369 = vmatpush.msrb.mxu3 %v202_v1 }
  0x47   :  { %310 = vmatpush.msrb.mxu0 %v153_v2  ;;  %329 = vmatpush.msrb.mxu1 %v170_v3 }
  0x48   :  { %370 = vmatpush.msrb.mxu3 %v201_v4 }
  0x49   :  { %311 = vmatpush.msrb.mxu0 %v152_v5  ;;  %330 = vmatpush.msrb.mxu1 %v169_v6  ;;  %v1275_v6 = vld [vmem:[%s1367_s5] sm:$0xf] }
  0x4a   :  { %371 = vmatpush.msrb.mxu3 %v200_v7  ;;  %v417_v7 = vperm.slane %v1275_v6, 0 }
  0x4b   :  { %331 = vmatpush.msrb.mxu1 %v168_v8 }
  0x5e   :  { %v78_v11 = vpop.permute.xlu2 %77 }
  0x5f   :  { %vm79_vm2 = vcmp.eq.s32.totalorder %v78_v11, %v39_v12 }
  0x67   :  { %v66_v16 = vpop.permute.xlu2 %65 }
  0x68   :  { %vm67_vm6 = vcmp.eq.s32.totalorder %v66_v16, %v39_v12  ;;  %v557_v16 = vld [vmem:[%s1368_s6 + $0x18] sm:$0xff] }
  0x70   :  { %v72_v20 = vpop.permute.xlu2 %71 }
  0x71   :  { %vm73_vm5 = vcmp.eq.s32.totalorder %v72_v20, %v39_v12 }
  0x74   :  { %v60_v13 = vpop.permute.xlu1 %59  ;;  %v54_v14 = vpop.permute.xlu0 %53 }
  0x75   :  { %vm61_vm0 = vcmp.eq.s32.totalorder %v60_v13, %v39_v12  ;;  %vm55_vm1 = vcmp.eq.s32.totalorder %v54_v14, %v39_v12 }
  0x76   :  { %655 = vmatmul.msk.f32.vlgmr.msra.gmra.mxu2 %vm55_vm1, %v709_v15  ;;  %656 = vmatmul.msk.f32.vlgmr.msra.gmra.mxu3 %vm61_vm0, %v709_v15 }
  0x77   :  { %457 = vmatpush.msra.mxu2 %v412_v22  ;;  %497 = vmatpush.msra.mxu3 %v414_v27  ;;  %v554_v22 = vld [vmem:[%s1368_s6] sm:$0xff] }
  0x79   :  { %458 = vmatpush.msra.mxu2 %v408_v23  ;;  %498 = vmatpush.msra.mxu3 %v410_v30  ;;  %v558_v23 = vld [vmem:[%s1369_s2] sm:$0xff] }
  0x7a   :  { %562 = vperm.xlu1 %686, %v558_v23   ;;  %v608_v30 = vld [vmem:[%s1370_s8 + $0x60] sm:$0xff] }
  0x7b   :  { %459 = vmatpush.msra.mxu2 %v404_v24  ;;  %499 = vmatpush.msra.mxu3 %v406_v33  ;;  %v611_v24 = vld [vmem:[%s1370_s8 + $0x78] sm:$0xff] }
  0x7d   :  { %v48_v17 = vpop.permute.xlu1 %47  ;;  %v42_v19 = vpop.permute.xlu0 %41  ;;  %460 = vmatpush.msra.mxu2 %v400_v25  ;;  %500 = vmatpush.msra.mxu3 %v402_v36  ;;  %v610_v25 = vld [vmem:[%s1370_s8 + $0x70] sm:$0xff]  ;;  %v420_v36 = vperm.slane %v1275_v6, 3 }
  0x7e   :  { %vm49_vm3 = vcmp.eq.s32.totalorder %v48_v17, %v39_v12  ;;  %vm43_vm4 = vcmp.eq.s32.totalorder %v42_v19, %v39_v12  ;;  %659 = vmatmul.msk.f32.vlgmr.msrb.gmra.mxu2 %vm79_vm2, %v709_v15  ;;  %v556_v19 = vld [vmem:[%s1368_s6 + $0x10] sm:$0xff] }
  0x7f   :  { %653 = vmatmul.msk.f32.vlgmr.msra.gmra.mxu0 %vm43_vm4, %v709_v15  ;;  %654 = vmatmul.msk.f32.vlgmr.msra.gmra.mxu1 %vm49_vm3, %v709_v15 }
  0x80   :  { %437 = vmatpush.msra.mxu0 %v411_v26  ;;  %461 = vmatpush.msra.mxu2 %v396_v28  ;;  %v609_v28 = vld [vmem:[%s1370_s8 + $0x68] sm:$0xff] }
  0x81   :  { %501 = vmatpush.msra.mxu3 %v398_v40  ;;  %616 = vmatpush.msra.mxu1 %v611_v24 }
  0x82   :  { %438 = vmatpush.msra.mxu0 %v407_v29  ;;  %462 = vmatpush.msra.mxu2 %v392_v31 }
  0x83   :  { %502 = vmatpush.msra.mxu3 %v394_v43  ;;  %617 = vmatpush.msra.mxu1 %v610_v25 }
  0x84   :  { %439 = vmatpush.msra.mxu0 %v403_v32  ;;  %463 = vmatpush.msra.mxu2 %v388_v34  ;;  %v607_v32 = vld [vmem:[%s1370_s8 + $0x58] sm:$0xff] }
  0x85   :  { %503 = vmatpush.msra.mxu3 %v390_v45  ;;  %618 = vmatpush.msra.mxu1 %v609_v28 }
  0x86   :  { %v84_v21 = vpop.permute.xlu1 %83  ;;  %440 = vmatpush.msra.mxu0 %v399_v35  ;;  %464 = vmatpush.msra.mxu2 %v384_v37  ;;  %v606_v35 = vld [vmem:[%s1370_s8 + $0x50] sm:$0xff] }
  0x87   :  { %vm85_vm7 = vcmp.eq.s32.totalorder %v84_v21, %v39_v12  ;;  %657 = vmatmul.msk.f32.vlgmr.msrb.gmra.mxu0 %vm67_vm6, %v709_v15  ;;  %658 = vmatmul.msk.f32.vlgmr.msrb.gmra.mxu1 %vm73_vm5, %v709_v15  ;;  %v418_v12 = vperm.slane %v1275_v6, 1  ;;  %v555_v21 = vld [vmem:[%s1368_s6 + $0x8] sm:$0xff] }
  0x88   :  { %660 = vmatmul.msk.f32.vlgmr.msrb.gmra.mxu3 %vm85_vm7, %v709_v15  ;;  %441 = vmatpush.msra.mxu0 %v395_v38 }
  0x89   :  { %477 = vmatpush.msrb.mxu2 %v413_v39  ;;  %504 = vmatpush.msra.mxu3 %v386_v48 }
  0x8a   :  { %442 = vmatpush.msra.mxu0 %v391_v41  ;;  %619 = vmatpush.msra.mxu1 %v608_v30  ;;  %v605_v41 = vld [vmem:[%s1370_s8 + $0x48] sm:$0xff] }
  0x8b   :  { %478 = vmatpush.msrb.mxu2 %v409_v42 }
  0x8c   :  { %443 = vmatpush.msra.mxu0 %v387_v18  ;;  %620 = vmatpush.msra.mxu1 %v607_v32  ;;  %v419_v18 = vperm.slane %v1275_v6, 2  ;;  %v597_v6 = vld [vmem:[%s1370_s8 + $0x8] sm:$0xff] }
  0x8d   :  { %479 = vmatpush.msrb.mxu2 %v405_v44 }
  0x8e   :  { %444 = vmatpush.msra.mxu0 %v383_v46  ;;  %621 = vmatpush.msra.mxu1 %v606_v35  ;;  %v604_v46 = vld [vmem:[%s1370_s8 + $0x40] sm:$0xff] }
  0x8f   :  { %480 = vmatpush.msrb.mxu2 %v401_v47 }
  0x90   :  { %582 = vmatpush.msrb.mxu0 %v557_v16  ;;  %622 = vmatpush.msra.mxu1 %v605_v41 }
  0x91   :  { %481 = vmatpush.msrb.mxu2 %v397_v49 }
  0x92   :  { %583 = vmatpush.msrb.mxu0 %v556_v19  ;;  %623 = vmatpush.msra.mxu1 %v604_v46  ;;  %v689_v19 = vld [vmem:[%s1372_s9] ss:$0 sm:$0xff] }
  0x93   :  { %482 = vmatpush.msrb.mxu2 %v393_v50 }
  0x94   :  { %584 = vmatpush.msrb.mxu0 %v555_v21 }
  0x95   :  { %483 = vmatpush.msrb.mxu2 %v389_v51  ;;  %v603_v51 = vld [vmem:[%s1370_s8 + $0x38] sm:$0xff] }
  0x96   :  { %585 = vmatpush.msrb.mxu0 %v554_v22  ;;  %624 = vmatpush.msra.mxu1 %v603_v51 }
  0x97   :  { %484 = vmatpush.msrb.mxu2 %v385_v52 }
  0xb6   :  { %v379_v3 = vpop.permute.xlu0 %378 }
  0xf9   :  { %v273_v56 = vpop.f32.mrf.mxu2  ;;  %v293_v58 = vpop.f32.mrf.mxu3 }
  0xfc   :  { %v233_v53 = vpop.f32.mrf.mxu0  ;;  %v253_v54 = vpop.f32.mrf.mxu1 }
  0xfd   :  { %v254_v55 = vadd.f32 %v253_v54, %v233_v53 }
  0xff   :  { %v274_v57 = vadd.f32 %v273_v56, %v254_v55  ;;  %v602_v55 = vld [vmem:[%s1370_s8 + $0x30] sm:$0xff] }
 0x100   :  { %625 = vmatpush.msra.mxu1 %v602_v55 }
 0x101   :  { %v294_v59 = vadd.f32 %v293_v58, %v274_v57  ;;  %v353_v0 = vpop.f32.mrf.mxu2  ;;  %v601_v57 = vld [vmem:[%s1370_s8 + $0x28] sm:$0xff] }
 0x102   :  { %626 = vmatpush.msra.mxu1 %v601_v57 }
 0x104   :  { %v313_v60 = vpop.f32.mrf.mxu0  ;;  %v333_v61 = vpop.f32.mrf.mxu1 }
 0x105   :  { %v314_v62 = vadd.f32 %v313_v60, %v294_v59 }
 0x107   :  { %v334_v63 = vadd.f32 %v333_v61, %v314_v62 }
 0x109   :  { %v354_v1 = vadd.f32 %v353_v0, %v334_v63 }
 0x10b   :  { %v373_v2 = vpop.f32.mrf.mxu3 }
 0x10c   :  { %v374_v4 = vadd.f32 %v373_v2, %v354_v1 }
 0x10e   :  { %v382_v5 = vsel %vm381_vm8, %v374_v4, %v379_v3  ;;  %v600_v4 = vld [vmem:[%s1370_s8 + $0x20] sm:$0xff] }
 0x10f   :  { %661 = vmatmul.msk.f32.vlgmr.msra.gmra.mxu0 %vm425_vm9, %v382_v5  ;;  %662 = vmatmul.msk.f32.vlgmr.msra.gmra.mxu2 %vm425_vm9, %v382_v5 }
 0x110   :  { %664 = vmatmul.msk.f32.vlgmr.msra.gmra.mxu3 %vm425_vm9, %v382_v5  ;;  %627 = vmatpush.msra.mxu1 %v600_v4 }
 0x117   :  { %663 = vmatmul.msk.f32.vlgmr.msrb.gmra.mxu2 %vm425_vm9, %v382_v5  ;;  %v599_v5 = vld [vmem:[%s1370_s8 + $0x18] sm:$0xff] }
 0x118   :  { %628 = vmatpush.msra.mxu1 %v599_v5 }
 0x18c   :  { %v446_v8 = vpop.f32.mrf.mxu0 }
 0x18d   :  { %v447_v10 = vadd.f32 %v446_v8, %v417_v7  ;;  %v596_v7 = vld [vmem:[%s1370_s8] sm:$0xff] }
 0x18e   :  { %v687_v8 = vld [vmem:[%s1366_s7] ss:$0 sm:$0xff] }
 0x18f   :  { %v665_v11 = vmul.f32 -1.442695, %v447_v10  ;;  %v563_v10 = vpop.permute.xlu1 %562 }
 0x191   :  { %690 = vpow2.f32 %v665_v11  ;;  %v566_v11 = vmul.f32 %v687_v8, %v563_v10 }
 0x192   :  { %v466_v13 = vpop.f32.mrf.mxu2 }
 0x193   :  { %v467_v14 = vadd.f32 %v466_v13, %v418_v12  ;;  %v506_v40 = vpop.f32.mrf.mxu3  ;;  %v688_v12 = vld [vmem:[%s1366_s7 + $0x1] ss:$0 sm:$0xff] }
 0x194   :  { %v507_v48 = vadd.f32 %v506_v40, %v420_v36 }
 0x195   :  { %v666_v15 = vmul.f32 -1.442695, %v467_v14 }
 0x197   :  { %v691_v17 = vpop.eup %690  ;;  %692 = vpow2.f32 %v666_v15 }
 0x198   :  { %v512_v20 = vadd.f32 1.0, %v691_v17 }
 0x19a   :  { %694 = vrcp.f32 %v512_v20  ;;  %v524_v34 = vand.u32 2147483648, %v512_v20  ;;  %v522_v38 = vand.u32 2147483647, %v512_v20  ;;  %vm518_vm11 = vweird.f32 %v512_v20  ;;  %v486_v45 = vpop.f32.mrf.mxu2 }
 0x19b   :  { %v487_v53 = vadd.f32 %v486_v45, %v419_v18 }
 0x19c   :  { %v525_v44 = vor.u32 1.1754944e-38, %v524_v34  ;;  %vm523_vm13 = vcmp.eq.f32.partialorder %v522_v38, 8.507059e+37 }
 0x19d   :  { %v693_v26 = vpop.eup %692 }
 0x19e   :  { %v531_v27 = vadd.f32 1.0, %v693_v26 }
 0x1a0   :  { %v695_v29 = vpop.eup %694  ;;  %696 = vrcp.f32 %v531_v27  ;;  %v543_v59 = vand.u32 2147483648, %v531_v27  ;;  %vm537_vm15 = vweird.f32 %v531_v27  ;;  %v541_v60 = vand.u32 2147483647, %v531_v27 }
 0x1a1   :  { %v514_v31 = vmul.f32 %v695_v29, %v512_v20  ;;  %vm519_vm10 = vweird.f32 %v695_v29 }
 0x1a2   :  { %vm520_vm12 = vmor %vm518_vm11, %vm519_vm10  ;;  %v544_v63 = vor.u32 1.1754944e-38, %v543_v59  ;;  %vm542_vm1 = vcmp.eq.f32.partialorder %v541_v60, 8.507059e+37 }
 0x1a3   :  { %v515_v33 = vsub.f32 1.0, %v514_v31 }
 0x1a5   :  { %v516_v37 = vmul.f32 %v695_v29, %v515_v33 }
 0x1a6   :  { %v697_v39 = vpop.eup %696 }
 0x1a7   :  { %v533_v42 = vmul.f32 %v697_v39, %v531_v27  ;;  %v517_v43 = vadd.f32 %v695_v29, %v516_v37  ;;  %vm538_vm14 = vweird.f32 %v697_v39 }
 0x1a8   :  { %vm539_vm0 = vmor %vm537_vm15, %vm538_vm14 }
 0x1a9   :  { %v534_v47 = vsub.f32 1.0, %v533_v42  ;;  %v521_v49 = vsel %vm520_vm12, %v695_v29, %v517_v43 }
 0x1aa   :  { %v526_v50 = vsel %vm523_vm13, %v525_v44, %v521_v49 }
 0x1ab   :  { %v547_v52 = vmul.f32 %v526_v50, %v507_v48  ;;  %v535_v54 = vmul.f32 %v697_v39, %v534_v47 }
 0x1ad   :  { %v548_v56 = vadd.f32 %v547_v52, %v487_v53  ;;  %v536_v58 = vadd.f32 %v697_v39, %v535_v54 }
 0x1af   :  { %698 = vtanh.f32 %v548_v56  ;;  %v540_v61 = vsel %vm539_vm0, %v697_v39, %v536_v58 }
 0x1b0   :  { %v545_v1 = vsel %vm542_vm1, %v544_v63, %v540_v61 }
 0x1b5   :  { %v699_v62 = vpop.eup %698 }
 0x1b6   :  { %v550_v0 = vsub.f32 %v1172_v9, %v699_v62  ;;  %v598_v9 = vld [vmem:[%s1370_s8 + $0x10] sm:$0xff] }
 0x1b7   :  { %629 = vmatpush.msra.mxu1 %v598_v9 }
 0x1b8   :  { %v551_v2 = vmul.f32 %v550_v0, %v545_v1 }
 0x1b9   :  { %630 = vmatpush.msra.mxu1 %v597_v6 }
 0x1ba   :  { %v552_v3 = vadd.f32 %v699_v62, %v551_v2 }
 0x1bb   :  { %631 = vmatpush.msra.mxu1 %v596_v7 }
 0x1bc   :  { %553 = vst.msk [vmem:[%s1371_s11] sm:$0xff] %vm381_vm8, %v552_v3  ;;  %667 = vmatmul.msk.f32.vlgmr.msrb.gmra.mxu0 %vm381_vm8, %v552_v3 }
 0x239   :  { %v587_v13 = vpop.f32.mrf.mxu0 }
 0x23a   :  { %v588_v14 = vadd.f32 %v587_v13, %v566_v11 }
 0x23c   :  { %v592_v15 = vadd.f32 %v688_v12, %v588_v14 }
 0x23e   :  { %v594_v16 = vmul.f32 0.01, %v592_v15  ;;  %vm593_vm2 = vcmp.gt.f32.partialorder %v592_v15, 0.0 }
 0x240   :  { %v595_v17 = vsel %vm593_vm2, %v592_v15, %v594_v16 }
 0x241   :  { %632 = vmatmul.f32.vlgmr.msra.gmra.mxu1 %v595_v17 }
 0x2be   :  { %v633_v20 = vpop.f32.mrf.mxu1 }
 0x2bf   :  { %v634_v21 = vadd.f32 %v689_v19, %v633_v20 }
 0x2c1   :  { %636 = vst [vmem:[%s1373_s10] sm:$0xff] %v634_v21 }

</bundles_post_ra>
